<compile_context>
chip_gen: v7x
topology: tpu7x:2x2x1
jax: 0.10.0
libtpu: 0.0.40
codegen_flags: <defaults>
</compile_context>

<pallas_src>
import functools

import jax
import jax.numpy as jnp
from jax.experimental import pallas as pl
from jax.experimental.pallas import tpu as pltpu

D_IN = 2            # input features (x, t)
D_HID = 50          # real hidden width
D_OUT = 1           # real output width
H = 128             # padded hidden width (lane-aligned)
N_HIDDEN_LAYERS = 4


def _act(pre_f32, bf16_tanh):
    """tanh activation, returned in bf16 for the next MXU matmul."""
    if bf16_tanh:
        # v6e / v7x: EUP is bf16-native -> tanh in bf16.
        return jnp.tanh(pre_f32.astype(jnp.bfloat16))
    # v5e: no bf16 VPU/EUP -> tanh in f32, cast only for the MXU operand.
    return jnp.tanh(pre_f32).astype(jnp.bfloat16)


def _mlp_kernel(x_ref, w1_ref, wh_ref, w6_ref, b_ref, o_ref, *, bf16_tanh):
    """Fused 6-layer MLP (tanh) on one row tile.

    x_ref  : [tile_m, 2]  f32
    w1_ref : [2, H]       f32  (cols >= 50 zero)
    wh_ref : [4, H, H]    bf16 (rows/cols >= 50 zero)
    w6_ref : [1, H]       f32  (transposed output weight, cols >= 50 zero)
    b_ref  : [6, H]       f32  (b1..b5 padded; b6 scalar at [5, 0])
    o_ref  : [tile_m, 1]  f32
    """
    x = x_ref[...]            # [tile_m, 2] f32
    b = b_ref[...]            # [6, H]      f32

    # Layer 1 (K=2): two broadcast multiply-adds on the VPU — avoids pushing a
    # nearly empty K=2 pass through the MXU.
    pre = x[:, 0:1] * w1_ref[0:1, :] + x[:, 1:2] * w1_ref[1:2, :] + b[0:1, :]
    h = _act(pre, bf16_tanh)                       # [tile_m, H] bf16

    # Hidden layers 2..5: bf16 MXU matmuls, f32 accumulation.
    for l in range(N_HIDDEN_LAYERS):
        pre = jnp.dot(h, wh_ref[l],
                      preferred_element_type=jnp.float32) + b[l + 1:l + 2, :]
        h = _act(pre, bf16_tanh)

    # Output layer (width 1): VPU multiply + cross-lane reduction (XLU) — the
    # MXU would be almost empty and the store stays a single real column.
    out = (jnp.sum(h.astype(jnp.float32) * w6_ref[...], axis=-1, keepdims=True)
           + b[5:6, 0:1])
    o_ref[...] = out.astype(o_ref.dtype)


def pack_params(params):
    """Pack + zero-pad the 6 (w, b) pairs into 4 kernel-friendly arrays.

    params[i] = (w [din, dout], b [1, dout]) with y = x @ w + b
    (PyTorch weights already transposed).
    """
    assert len(params) == 6
    w1, b1 = params[0]
    w6, b6 = params[5]

    w1p = jnp.zeros((D_IN, H), jnp.float32).at[:, :D_HID].set(w1)
    whp = jnp.zeros((N_HIDDEN_LAYERS, H, H), jnp.bfloat16)
    bp = jnp.zeros((6, H), jnp.float32)
    bp = bp.at[0, :D_HID].set(b1[0])
    for i, (w, b) in enumerate(params[1:5]):
        whp = whp.at[i, :D_HID, :D_HID].set(w.astype(jnp.bfloat16))
        bp = bp.at[i + 1, :D_HID].set(b[0])
    # Output weight stored transposed [1, H] (f32) for the lane reduction.
    w6p = jnp.zeros((1, H), jnp.float32).at[0, :D_HID].set(w6[:, 0])
    bp = bp.at[5, 0].set(b6[0, 0])
    return w1p, whp, w6p, bp


def _round_up(x, m):
    return ((x + m - 1) // m) * m


def _bf16_tanh_default():
    """bf16 tanh on v6e/v7x (bf16 EUP); f32 elementwise math on v5e/older."""
    try:
        kind = jax.devices()[0].device_kind.lower()
    except Exception:
        return False
    return ("v6" in kind) or ("v7" in kind) or ("tpu7" in kind)


def mlp_forward(x, packed, *, tile_m=None, bf16_tanh=None):
    """x: [N, 2] f32, packed = pack_params(params).  Returns [N, 1] f32."""
    w1p, whp, w6p, bp = packed
    n, din = x.shape
    assert din == D_IN

    if bf16_tanh is None:
        bf16_tanh = _bf16_tanh_default()

    if tile_m is None:
        # Big row tiles amortize the ~0.35 us per-grid-step cost; splitting
        # into >= 2 steps keeps both v7x TensorCores busy on mid-sized
        # batches; the 4096 cap keeps the double-buffered (tile_m,2)-in /
        # (tile_m,1)-out blocks plus ~130 KiB of resident weights far below
        # every generation's VMEM limit (64 MiB on v7x).
        tile_m = min(4096, max(8, _round_up(pl.cdiv(n, 2), 8)))
    tile_m = max(8, _round_up(tile_m, 8))

    grid = (pl.cdiv(n, tile_m),)   # ragged last block is masked by Pallas

    kernel = functools.partial(_mlp_kernel, bf16_tanh=bf16_tanh)

    return pl.pallas_call(
        kernel,
        out_shape=jax.ShapeDtypeStruct((n, D_OUT), jnp.float32),
        grid_spec=pltpu.PrefetchScalarGridSpec(
            num_scalar_prefetch=0,
            grid=grid,
            in_specs=[
                pl.BlockSpec((tile_m, D_IN), lambda i: (i, 0)),
                pl.BlockSpec(w1p.shape, lambda i: (0, 0)),
                pl.BlockSpec(whp.shape, lambda i: (0, 0, 0)),
                pl.BlockSpec(w6p.shape, lambda i: (0, 0)),
                pl.BlockSpec(bp.shape, lambda i: (0, 0)),
            ],
            out_specs=pl.BlockSpec((tile_m, D_OUT), lambda i: (i, 0)),
        ),
        compiler_params=pltpu.CompilerParams(
            dimension_semantics=("parallel",)),
    )(x, w1p, whp, w6p, bp)


def init_params(key):
    """Deterministic init mirroring torch.nn.Linear default U(-1/sqrt(fan_in), +)."""
    dims = [(D_IN, D_HID)] + [(D_HID, D_HID)] * N_HIDDEN_LAYERS + [(D_HID, D_OUT)]
    params = []
    for (din, dout) in dims:
        key, kw, kb = jax.random.split(key, 3)
        bound = 1.0 / jnp.sqrt(din)
        w = jax.random.uniform(kw, (din, dout), jnp.float32, -bound, bound)
        b = jax.random.uniform(kb, (1, dout), jnp.float32, -bound, bound)
        params.append((w, b))
    return params


def mlp_reference(x, params):
    h = x
    for i, (w, b) in enumerate(params):
        h = h @ w + b
        if i != len(params) - 1:
            h = jnp.tanh(h)
    return h


if __name__ == "__main__":
    key = jax.random.PRNGKey(0)
    kp, kx = jax.random.split(key)
    params = init_params(kp)
    packed = pack_params(params)

    # Small demo batch of (x, t) collocation points, features = 2.
    n = 256
    x = jax.random.uniform(kx, (n, D_IN), jnp.float32)
    ref = mlp_reference(x, params)

    # bf16 weights/activations vs. f32 reference -> loosened tolerances.
    ATOL, RTOL = 5e-2, 5e-2

    # 1) default tiling (>= 2 grid steps).
    out = jax.block_until_ready(mlp_forward(x, packed))
    assert out.shape == (n, 1)
    assert jnp.allclose(out, ref, atol=ATOL, rtol=RTOL), (
        "mismatch (default tile): max|err|=%g"
        % float(jnp.max(jnp.abs(out - ref))))

    # 2) explicit small tile (multi-step pipelined grid).
    out_tiled = jax.block_until_ready(mlp_forward(x, packed, tile_m=64))
    assert jnp.allclose(out_tiled, ref, atol=ATOL, rtol=RTOL), "mismatch (tiled)"

    # 3) ragged batch (not a multiple of 8 or the tile) -> masked last block,
    #    no explicit padding in the wrapper.
    n2 = 100
    x2 = jax.random.uniform(jax.random.PRNGKey(1), (n2, D_IN), jnp.float32)
    out2 = jax.block_until_ready(mlp_forward(x2, packed))
    assert out2.shape == (n2, 1)
    assert jnp.allclose(out2, mlp_reference(x2, params), atol=ATOL, rtol=RTOL), \
        "mismatch (ragged batch)"

    print("KERNEL_OK")
</pallas_src>

<mosaic_0001>
module attributes {stable_mosaic.version = 11 : i64} {
  func.func @_mlp_kernel(%arg0: i32, %arg1: memref<128x2xf32, #tpu.memory_space<vmem>>, %arg2: memref<2x128xf32, #tpu.memory_space<vmem>>, %arg3: memref<4x128x128xbf16, #tpu.memory_space<vmem>>, %arg4: memref<1x128xf32, #tpu.memory_space<vmem>>, %arg5: memref<6x128xf32, #tpu.memory_space<vmem>>, %arg6: memref<128x1xf32, #tpu.memory_space<vmem>>) attributes {dimension_semantics = [#tpu.dimension_semantics<parallel>], iteration_bounds = array<i64: 2>, scalar_prefetch = 0 : i64, scratch_operands = 0 : i64, tpu.core_type = #tpu.core_type<tc>, window_params = [{transform_indices = @transform_0, window_bounds = array<i64: 128, 2>}, {pipeline_mode = #tpu.pipeline_mode<synchronous>, transform_indices = @transform_1, window_bounds = array<i64: 2, 128>}, {pipeline_mode = #tpu.pipeline_mode<synchronous>, transform_indices = @transform_2, window_bounds = array<i64: 4, 128, 128>}, {pipeline_mode = #tpu.pipeline_mode<synchronous>, transform_indices = @transform_3, window_bounds = array<i64: 1, 128>}, {pipeline_mode = #tpu.pipeline_mode<synchronous>, transform_indices = @transform_4, window_bounds = array<i64: 6, 128>}, {transform_indices = @transform_5, window_bounds = array<i64: 128, 1>}]} {
    %c0 = arith.constant 0 : index
    %c0_0 = arith.constant 0 : index
    %0 = vector.load %arg1[%c0, %c0_0] : memref<128x2xf32, #tpu.memory_space<vmem>>, vector<128x2xf32>
    %c0_1 = arith.constant 0 : index
    %c0_2 = arith.constant 0 : index
    %1 = vector.load %arg5[%c0_1, %c0_2] : memref<6x128xf32, #tpu.memory_space<vmem>>, vector<6x128xf32>
    %2 = vector.extract_strided_slice %0 {offsets = [0, 0], sizes = [128, 1], strides = [1, 1]} : vector<128x2xf32> to vector<128x1xf32>
    %c0_3 = arith.constant 0 : index
    %c0_4 = arith.constant 0 : index
    %3 = vector.load %arg2[%c0_3, %c0_4] : memref<2x128xf32, #tpu.memory_space<vmem>>, vector<1x128xf32>
    %4 = vector.broadcast %2 : vector<128x1xf32> to vector<128x128xf32>
    %5 = vector.broadcast %3 : vector<1x128xf32> to vector<128x128xf32>
    %6 = arith.mulf %4, %5 : vector<128x128xf32>
    %7 = vector.extract_strided_slice %0 {offsets = [0, 1], sizes = [128, 1], strides = [1, 1]} : vector<128x2xf32> to vector<128x1xf32>
    %c1 = arith.constant 1 : index
    %c0_5 = arith.constant 0 : index
    %8 = vector.load %arg2[%c1, %c0_5] : memref<2x128xf32, #tpu.memory_space<vmem>>, vector<1x128xf32>
    %9 = vector.broadcast %7 : vector<128x1xf32> to vector<128x128xf32>
    %10 = vector.broadcast %8 : vector<1x128xf32> to vector<128x128xf32>
    %11 = arith.mulf %9, %10 : vector<128x128xf32>
    %12 = arith.addf %6, %11 : vector<128x128xf32>
    %13 = vector.extract_strided_slice %1 {offsets = [0, 0], sizes = [1, 128], strides = [1, 1]} : vector<6x128xf32> to vector<1x128xf32>
    %14 = vector.broadcast %13 : vector<1x128xf32> to vector<128x128xf32>
    %15 = arith.addf %12, %14 : vector<128x128xf32>
    %16 = math.tanh %15 : vector<128x128xf32>
    %17 = arith.truncf %16 : vector<128x128xf32> to vector<128x128xbf16>
    %c0_6 = arith.constant 0 : index
    %c0_7 = arith.constant 0 : index
    %c0_8 = arith.constant 0 : index
    %18 = vector.load %arg3[%c0_6, %c0_7, %c0_8] : memref<4x128x128xbf16, #tpu.memory_space<vmem>>, vector<1x128x128xbf16>
    %19 = vector.shape_cast %18 : vector<1x128x128xbf16> to vector<128x128xbf16>
    %cst = arith.constant dense<0.000000e+00> : vector<128x128xf32>
    %20 = tpu.matmul %17, %19, %cst {dimension_numbers = #tpu.dot_dimension_numbers<[1], [0], [0], [1], [0, 0, 1, 1], [], []>} : vector<128x128xbf16>, vector<128x128xbf16>, vector<128x128xf32> -> vector<128x128xf32>
    %21 = vector.extract_strided_slice %1 {offsets = [1, 0], sizes = [1, 128], strides = [1, 1]} : vector<6x128xf32> to vector<1x128xf32>
    %22 = vector.broadcast %21 : vector<1x128xf32> to vector<128x128xf32>
    %23 = arith.addf %20, %22 : vector<128x128xf32>
    %24 = math.tanh %23 : vector<128x128xf32>
    %25 = arith.truncf %24 : vector<128x128xf32> to vector<128x128xbf16>
    %c1_9 = arith.constant 1 : index
    %c0_10 = arith.constant 0 : index
    %c0_11 = arith.constant 0 : index
    %26 = vector.load %arg3[%c1_9, %c0_10, %c0_11] : memref<4x128x128xbf16, #tpu.memory_space<vmem>>, vector<1x128x128xbf16>
    %27 = vector.shape_cast %26 : vector<1x128x128xbf16> to vector<128x128xbf16>
    %cst_12 = arith.constant dense<0.000000e+00> : vector<128x128xf32>
    %28 = tpu.matmul %25, %27, %cst_12 {dimension_numbers = #tpu.dot_dimension_numbers<[1], [0], [0], [1], [0, 0, 1, 1], [], []>} : vector<128x128xbf16>, vector<128x128xbf16>, vector<128x128xf32> -> vector<128x128xf32>
    %29 = vector.extract_strided_slice %1 {offsets = [2, 0], sizes = [1, 128], strides = [1, 1]} : vector<6x128xf32> to vector<1x128xf32>
    %30 = vector.broadcast %29 : vector<1x128xf32> to vector<128x128xf32>
    %31 = arith.addf %28, %30 : vector<128x128xf32>
    %32 = math.tanh %31 : vector<128x128xf32>
    %33 = arith.truncf %32 : vector<128x128xf32> to vector<128x128xbf16>
    %c2 = arith.constant 2 : index
    %c0_13 = arith.constant 0 : index
    %c0_14 = arith.constant 0 : index
    %34 = vector.load %arg3[%c2, %c0_13, %c0_14] : memref<4x128x128xbf16, #tpu.memory_space<vmem>>, vector<1x128x128xbf16>
    %35 = vector.shape_cast %34 : vector<1x128x128xbf16> to vector<128x128xbf16>
    %cst_15 = arith.constant dense<0.000000e+00> : vector<128x128xf32>
    %36 = tpu.matmul %33, %35, %cst_15 {dimension_numbers = #tpu.dot_dimension_numbers<[1], [0], [0], [1], [0, 0, 1, 1], [], []>} : vector<128x128xbf16>, vector<128x128xbf16>, vector<128x128xf32> -> vector<128x128xf32>
    %37 = vector.extract_strided_slice %1 {offsets = [3, 0], sizes = [1, 128], strides = [1, 1]} : vector<6x128xf32> to vector<1x128xf32>
    %38 = vector.broadcast %37 : vector<1x128xf32> to vector<128x128xf32>
    %39 = arith.addf %36, %38 : vector<128x128xf32>
    %40 = math.tanh %39 : vector<128x128xf32>
    %41 = arith.truncf %40 : vector<128x128xf32> to vector<128x128xbf16>
    %c3 = arith.constant 3 : index
    %c0_16 = arith.constant 0 : index
    %c0_17 = arith.constant 0 : index
    %42 = vector.load %arg3[%c3, %c0_16, %c0_17] : memref<4x128x128xbf16, #tpu.memory_space<vmem>>, vector<1x128x128xbf16>
    %43 = vector.shape_cast %42 : vector<1x128x128xbf16> to vector<128x128xbf16>
    %cst_18 = arith.constant dense<0.000000e+00> : vector<128x128xf32>
    %44 = tpu.matmul %41, %43, %cst_18 {dimension_numbers = #tpu.dot_dimension_numbers<[1], [0], [0], [1], [0, 0, 1, 1], [], []>} : vector<128x128xbf16>, vector<128x128xbf16>, vector<128x128xf32> -> vector<128x128xf32>
    %45 = vector.extract_strided_slice %1 {offsets = [4, 0], sizes = [1, 128], strides = [1, 1]} : vector<6x128xf32> to vector<1x128xf32>
    %46 = vector.broadcast %45 : vector<1x128xf32> to vector<128x128xf32>
    %47 = arith.addf %44, %46 : vector<128x128xf32>
    %48 = math.tanh %47 : vector<128x128xf32>
    %49 = arith.truncf %48 : vector<128x128xf32> to vector<128x128xbf16>
    %50 = arith.extf %49 : vector<128x128xbf16> to vector<128x128xf32>
    %c0_19 = arith.constant 0 : index
    %c0_20 = arith.constant 0 : index
    %51 = vector.load %arg4[%c0_19, %c0_20] : memref<1x128xf32, #tpu.memory_space<vmem>>, vector<1x128xf32>
    %52 = vector.broadcast %51 : vector<1x128xf32> to vector<128x128xf32>
    %53 = arith.mulf %50, %52 : vector<128x128xf32>
    %cst_21 = arith.constant dense<0.000000e+00> : vector<128xf32>
    %54 = vector.multi_reduction <add>, %53, %cst_21 [1] : vector<128x128xf32> to vector<128xf32>
    %55 = vector.shape_cast %54 : vector<128xf32> to vector<128x1xf32>
    %56 = vector.extract_strided_slice %1 {offsets = [5, 0], sizes = [1, 1], strides = [1, 1]} : vector<6x128xf32> to vector<1x1xf32>
    %57 = vector.broadcast %56 : vector<1x1xf32> to vector<128x1xf32>
    %58 = arith.addf %55, %57 : vector<128x1xf32>
    %c0_22 = arith.constant 0 : index
    %c0_23 = arith.constant 0 : index
    %59 = vector.load %arg6[%c0_22, %c0_23] : memref<128x1xf32, #tpu.memory_space<vmem>>, vector<128x1xf32>
    tpu.vector_store %arg6[%c0_22, %c0_23], %58 {strides = array<i32>} : memref<128x1xf32, #tpu.memory_space<vmem>>, vector<128x1xf32>,
    return
  }
  func.func @transform_0(%arg0: i32) -> (i32, i32) {
    %c0_i32 = arith.constant 0 : i32
    %c0_i32_0 = arith.constant 0 : i32
    return %arg0, %c0_i32 : i32, i32
  }
  func.func @transform_1(%arg0: i32) -> (i32, i32) {
    %c0_i32 = arith.constant 0 : i32
    %c0_i32_0 = arith.constant 0 : i32
    %c0_i32_1 = arith.constant 0 : i32
    return %c0_i32, %c0_i32_0 : i32, i32
  }
  func.func @transform_2(%arg0: i32) -> (i32, i32, i32) {
    %c0_i32 = arith.constant 0 : i32
    %c0_i32_0 = arith.constant 0 : i32
    %c0_i32_1 = arith.constant 0 : i32
    %c0_i32_2 = arith.constant 0 : i32
    return %c0_i32, %c0_i32_0, %c0_i32_1 : i32, i32, i32
  }
  func.func @transform_3(%arg0: i32) -> (i32, i32) {
    %c0_i32 = arith.constant 0 : i32
    %c0_i32_0 = arith.constant 0 : i32
    %c0_i32_1 = arith.constant 0 : i32
    return %c0_i32, %c0_i32_0 : i32, i32
  }
  func.func @transform_4(%arg0: i32) -> (i32, i32) {
    %c0_i32 = arith.constant 0 : i32
    %c0_i32_0 = arith.constant 0 : i32
    %c0_i32_1 = arith.constant 0 : i32
    return %c0_i32, %c0_i32_0 : i32, i32
  }
  func.func @transform_5(%arg0: i32) -> (i32, i32) {
    %c0_i32 = arith.constant 0 : i32
    %c0_i32_0 = arith.constant 0 : i32
    return %arg0, %c0_i32 : i32, i32
  }
}

</mosaic_0001>

<bundles_post_ra>
// kernel: tpu_custom_call.1
= control target key start
LH: loop header
LB: loop body
LE: loop exit
PB: predicated region body
PF: predicated region fallthrough
CT: control target
= control target key end

     0   :  { %s1962_s18 = smov 0   ;;  %s2329_s0 = inlined_call_operand.vmem [shape: f32[256,2], index: 0, kind: input, shape index: {}]   ;;  %s2330_s1 = inlined_call_operand.vmem [shape: f32[2,128], index: 1, kind: input, shape index: {}]   ;;  %s2331_s2 = inlined_call_operand.vmem [shape: bf16[4,128,128], index: 2, kind: input, shape index: {}]   ;;  %s2332_s3 = inlined_call_operand.vmem [shape: f32[1,128], index: 3, kind: input, shape index: {}]   ;;  %s2333_s4 = inlined_call_operand.vmem [shape: f32[6,128], index: 4, kind: input, shape index: {}]   ;;  %s2334_s5 = inlined_call_operand.vmem [shape: f32[256,1], index: 5, kind: output, shape index: {}]  }
   0x1 LB: > { %s1415_s19 = sadd.s32 4294967295, %s1928_s18   ;;  %p1419_p0 = scmp.ge.s32.totalorder %s1928_s18, 1  ;;  %s1928_s18 = sphi %s1962_s18, %s15_s18  }
   0x2   : > { %p188_p1 = scmp.lt.s32.totalorder %s1928_s18, 3 }
   0x4   : > { %p189_p2 = pnand %p1419_p0, %p188_p1 }
   0x5   : > { %s1420_s20 = sshll.u32 (!%p189_p2), %s1415_s19, 4  ;;  %v1930_v0 = vmov (!%p189_p2), 1   ;;  %v1729_v7 = vld [vmem:[%s2331_s2] sm:$0xff] (!%p189_p2)   ;;  %v1931_v8 = vmov (!%p189_p2), 0   ;;  %v1730_v9 = vld [vmem:[%s2331_s2 + $0x8] sm:$0xff] (!%p189_p2)   ;;  %v1731_v11 = vld [vmem:[%s2331_s2 + $0x10] sm:$0xff] (!%p189_p2)   ;;  %v448_v31 = vlaneseq (!%p189_p2) }
   0x6   : > { %192 = sbr.rel (%p189_p2) target bundleno = 1326 (0x52e), region = 40  ;;  %1713 = vset.pattern.permute.xlu0 (!%p189_p2), %v1930_v0  ;;  %1711 = vset.pattern.permute.xlu1 (!%p189_p2), %v1930_v0  ;;  %p217_p3 = scmp.lt.s32.totalorder (!%p189_p2), %s1420_s20, 31  ;;  %v1732_v12 = vld [vmem:[%s2331_s2 + $0x18] sm:$0xff] (!%p189_p2)   ;;  %v1733_v14 = vld [vmem:[%s2331_s2 + $0x20] sm:$0xff] (!%p189_p2)   ;;  %v1734_v15 = vld [vmem:[%s2331_s2 + $0x28] sm:$0xff] (!%p189_p2)   ;;  %vm1342_vm0 = vcmask (!%p189_p2), 7168  }
   0x7   : > { %1573 = vmatprep.subr.bf16.mxu0 (!%p189_p2), %v1729_v7  ;;  %v1735_v18 = vld [vmem:[%s2331_s2 + $0x30] sm:$0xff] (!%p189_p2)   ;;  %v1736_v19 = vld [vmem:[%s2331_s2 + $0x38] sm:$0xff] (!%p189_p2)   ;;  %v1737_v26 = vld [vmem:[%s2331_s2 + $0x40] sm:$0xff] (!%p189_p2)   ;;  %v2047_v34 = vshrl.u32 (!%p189_p2), %v448_v31, 7 }
   0x8   : > { %1574 = vmatpush3.bf16.msra.mxu0 (!%p189_p2), %v1729_v7  ;;  %v1738_v27 = vld [vmem:[%s2331_s2 + $0x48] sm:$0xff] (!%p189_p2)   ;;  %1605 = vmatprep.subr.bf16.mxu1 (!%p189_p2), %v1737_v26  ;;  %v1739_v28 = vld [vmem:[%s2331_s2 + $0x50] sm:$0xff] (!%p189_p2)   ;;  %v2054_v37 = vld [vmem:[%s2330_s1 + $0x1] ss:$0 sm:$0xff] (!%p189_p2) }
   0x9   : > { %1575 = vmatprep.subr.bf16.mxu0 (!%p189_p2), %v1730_v9  ;;  %1606 = vmatpush3.bf16.msra.mxu1 (!%p189_p2), %v1737_v26  ;;  %v450_v38 = vsub.s32 (!%p189_p2), 0, %v2047_v34  ;;  %v2060_v39 = vld [vmem:[%s2333_s4] sm:$0x3f] (!%p189_p2) }
   0xa   : > { %1607 = vmatprep.subr.bf16.mxu1 (!%p189_p2), %v1738_v27  ;;  %v2065_v40 = vld [vmem:[%s2330_s1] ss:$0 sm:$0xff] (!%p189_p2) }
   0xb   : > { %v2070_v45 = vrot.slane (!%p189_p2), %v2060_v39, %v450_v38 }
   0xc   : > { %1576 = vmatpush3.bf16.msra.mxu0 (!%p189_p2), %v1730_v9 }
   0xd   : > { %s2336_s20 = smov (!%p217_p3, %s1420_s20), 31  ;;  %1577 = vmatprep.subr.bf16.mxu0 %v1731_v11  ;;  %1608 = vmatpush3.bf16.msra.mxu1 %v1738_v27 }
   0xe   : > { %s1421_s21 = sshll.u32 %s2336_s20, 3  ;;  %1609 = vmatprep.subr.bf16.mxu1 %v1739_v28 }
   0xf   : > { %s1980_s24 = scalar_lea.vmem %s2329_s0, %s1421_s21  ;;  %s2292_s10 = scalar_lea.vmem %s2334_s5, %s1421_s21 }
  0x10   : > { %v231_v1 = vld [vmem:[%s1980_s24 + $0x10] sm:$0xff]  ;;  %v229_v2 = vld [vmem:[%s1980_s24] sm:$0xff]  ;;  %v230_v4 = vld [vmem:[%s1980_s24 + $0x8] sm:$0xff]  ;;  %1578 = vmatpush3.bf16.msra.mxu0 %v1731_v11 }
  0x11   : > { %357 = vperm.xlu0 %1713, %v231_v1   ;;  %349 = vperm.xlu1 %1711, %v229_v2   ;;  %v235_v3 = vld [vmem:[%s1980_s24 + $0x30] sm:$0xff]  ;;  %v232_v6 = vld [vmem:[%s1980_s24 + $0x18] sm:$0xff]  ;;  %v233_v10 = vld [vmem:[%s1980_s24 + $0x20] sm:$0xff] }
  0x12   : > { %v239_v5 = vld [vmem:[%s1980_s24 + $0x50] sm:$0xff]  ;;  %v234_v13 = vld [vmem:[%s1980_s24 + $0x28] sm:$0xff]  ;;  %1579 = vmatprep.subr.bf16.mxu0 %v1732_v12  ;;  %v236_v17 = vld [vmem:[%s1980_s24 + $0x38] sm:$0xff]  ;;  %1610 = vmatpush3.bf16.msra.mxu1 %v1739_v28 }
  0x13   : > { %v238_v16 = vld [vmem:[%s1980_s24 + $0x48] sm:$0xff]  ;;  %v237_v21 = vld [vmem:[%s1980_s24 + $0x40] sm:$0xff]  ;;  %v243_v22 = vld [vmem:[%s1980_s24 + $0x70] sm:$0xff] }
  0x14   : > { %1580 = vmatpush3.bf16.msra.mxu0 %v1732_v12  ;;  %v242_v20 = vld [vmem:[%s1980_s24 + $0x68] sm:$0xff]  ;;  %v240_v23 = vld [vmem:[%s1980_s24 + $0x58] sm:$0xff]  ;;  %v241_v24 = vld [vmem:[%s1980_s24 + $0x60] sm:$0xff] }
  0x15   : > { %373 = vperm.xlu0 %1713, %v235_v3   ;;  %353 = vperm.xlu1 %1711, %v230_v4   ;;  %v244_v25 = vld [vmem:[%s1980_s24 + $0x78] sm:$0xff] }
  0x16   : > { %1581 = vmatprep.subr.bf16.mxu0 %v1733_v14 }
  0x18   : > { %1582 = vmatpush3.bf16.msra.mxu0 %v1733_v14 }
  0x19   : > { %389 = vperm.xlu0 %1713, %v239_v5   ;;  %1712 = vset.pattern.permute.xlu1 %v1931_v8 }
  0x1a   : > { %264 = vperm.xlu1 %1712, %v232_v6   ;;  %1583 = vmatprep.subr.bf16.mxu0 %v1734_v15 }
  0x1c   : > { %1584 = vmatpush3.bf16.msra.mxu0 %v1734_v15 }
  0x1d   : > { %1722 = vset.pattern.permute.xlu0 %v1931_v8  ;;  %1585 = vmatprep.subr.bf16.mxu0 %v1735_v18 }
  0x1e   : > { %249 = vperm.xlu0 %1722, %v229_v2   ;;  %1714 = vset.pattern.permute.xlu1 %v1930_v0 }
  0x1f   : > { %361 = vperm.xlu1 %1714, %v232_v6  }
  0x20   : > { %1586 = vmatpush3.bf16.msra.mxu0 %v1735_v18 }
  0x21   : > { %1587 = vmatprep.subr.bf16.mxu0 %v1736_v19 }
  0x22   : > { %254 = vperm.xlu0 %1722, %v230_v4  }
  0x23   : > { %1715 = vset.pattern.permute.xlu1 %v1931_v8 }
  0x24   : > { %269 = vperm.xlu1 %1715, %v233_v10   ;;  %1588 = vmatpush3.bf16.msra.mxu0 %v1736_v19 }
  0x26   : > { %259 = vperm.xlu0 %1722, %v231_v1  }
  0x28   : > { %1716 = vset.pattern.permute.xlu1 %v1930_v0 }
  0x29   : > { %365 = vperm.xlu1 %1716, %v233_v10  }
  0x2a   : > { %274 = vperm.xlu0 %1722, %v234_v13  }
  0x2d   : > { %369 = vperm.xlu1 %1716, %v234_v13  }
  0x2e   : > { %279 = vperm.xlu0 %1722, %v235_v3  }
  0x31   : > { %1717 = vset.pattern.permute.xlu1 %v1931_v8 }
  0x32   : > { %294 = vperm.xlu0 %1722, %v238_v16   ;;  %284 = vperm.xlu1 %1717, %v236_v17  }
  0x36   : > { %299 = vperm.xlu0 %1722, %v239_v5   ;;  %1718 = vset.pattern.permute.xlu1 %v1930_v0 }
  0x37   : > { %377 = vperm.xlu1 %1718, %v236_v17  }
  0x3a   : > { %314 = vperm.xlu0 %1722, %v242_v20  }
  0x3b   : > { %1719 = vset.pattern.permute.xlu1 %v1931_v8 }
  0x3c   : > { %289 = vperm.xlu1 %1719, %v237_v21  }
  0x3e   : > { %319 = vperm.xlu0 %1722, %v243_v22  }
  0x40   : > { %1720 = vset.pattern.permute.xlu1 %v1930_v0 }
  0x41   : > { %381 = vperm.xlu1 %1720, %v237_v21  }
  0x42   : > { %1727 = vset.pattern.permute.xlu0 %v1930_v0 }
  0x43   : > { %405 = vperm.xlu0 %1727, %v243_v22  }
  0x45   : > { %385 = vperm.xlu1 %1720, %v238_v16  }
  0x49   : > { %1721 = vset.pattern.permute.xlu1 %v1931_v8 }
  0x4a   : > { %304 = vperm.xlu1 %1721, %v240_v23  }
  0x4e   : > { %1723 = vset.pattern.permute.xlu1 %v1930_v0 }
  0x4f   : > { %393 = vperm.xlu1 %1723, %v240_v23  }
  0x53   : > { %1724 = vset.pattern.permute.xlu1 %v1931_v8 }
  0x54   : > { %309 = vperm.xlu1 %1724, %v241_v24  }
  0x58   : > { %1725 = vset.pattern.permute.xlu1 %v1930_v0 }
  0x59   : > { %397 = vperm.xlu1 %1725, %v241_v24  }
  0x5d   : > { %401 = vperm.xlu1 %1725, %v242_v20  }
  0x61   : > { %1726 = vset.pattern.permute.xlu1 %v1931_v8 }
  0x62   : > { %324 = vperm.xlu1 %1726, %v244_v25  }
  0x66   : > { %1728 = vset.pattern.permute.xlu1 %v1930_v0 }
  0x67   : > { %409 = vperm.xlu1 %1728, %v244_v25  }
  0x90   : > { %v350_v29 = vpop.permute.xlu1 %349  ;;  %v358_v30 = vpop.permute.xlu0 %357 }
  0x91   : > { %v416_v42 = vmul.f32 %v2054_v37, %v350_v29  ;;  %v418_v55 = vmul.f32 %v2054_v37, %v358_v30 }
  0x94   : > { %v354_v32 = vpop.permute.xlu1 %353  ;;  %v374_v33 = vpop.permute.xlu0 %373 }
  0x95   : > { %v417_v50 = vmul.f32 %v2054_v37, %v354_v32  ;;  %v422_v10 = vmul.f32 %v2054_v37, %v374_v33 }
  0x98   : > { %v2049_v35 = vpop.permute.xlu0 %389 }
  0x99   : > { %v265_v36 = vpop.permute.xlu1 %264 }
  0x9a   : > { %v334_v48 = vmul.f32 %v2065_v40, %v265_v36 }
  0x9d   : > { %v250_v41 = vpop.permute.xlu0 %249 }
  0x9e   : > { %v331_v43 = vmul.f32 %v2065_v40, %v250_v41  ;;  %v362_v44 = vpop.permute.xlu1 %361 }
  0x9f   : > { %v419_v46 = vmul.f32 %v2054_v37, %v362_v44 }
  0xa0   : > { %v432_v47 = vadd.f32 %v416_v42, %v331_v43 }
  0xa1   : > { %v255_v49 = vpop.permute.xlu0 %254  ;;  %v435_v53 = vadd.f32 %v419_v46, %v334_v48 }
  0xa2   : > { %v332_v51 = vmul.f32 %v2065_v40, %v255_v49  ;;  %v452_v52 = vadd.f32 %v2070_v45, %v432_v47 }
  0xa3   : > { %v270_v54 = vpop.permute.xlu1 %269  ;;  %v455_v60 = vadd.f32 %v2070_v45, %v435_v53 }
  0xa4   : > { %v433_v56 = vadd.f32 %v417_v50, %v332_v51  ;;  %1761 = vtanh.f32 %v452_v52  ;;  %v335_v63 = vmul.f32 %v2065_v40, %v270_v54  ;;  %v426_v50 = vmul.f32 %v2054_v37, %v2049_v35 }
  0xa5   : > { %v260_v57 = vpop.permute.xlu0 %259 }
  0xa6   : > { %v453_v58 = vadd.f32 %v2070_v45, %v433_v56  ;;  %v333_v59 = vmul.f32 %v2065_v40, %v260_v57 }
  0xa8   : > { %1763 = vtanh.f32 %v453_v58  ;;  %v434_v61 = vadd.f32 %v418_v55, %v333_v59  ;;  %v366_v62 = vpop.permute.xlu1 %365 }
  0xa9   : > { %v420_v0 = vmul.f32 %v2054_v37, %v366_v62  ;;  %v275_v1 = vpop.permute.xlu0 %274  ;;  %1765 = vtanh.f32 %v455_v60 }
  0xaa   : > { %v454_v2 = vadd.f32 %v2070_v45, %v434_v61  ;;  %v336_v4 = vmul.f32 %v2065_v40, %v275_v1 }
  0xab   : > { %v436_v3 = vadd.f32 %v420_v0, %v335_v63 }
  0xac   : > { %1767 = vtanh.f32 %v454_v2  ;;  %v370_v5 = vpop.permute.xlu1 %369 }
  0xad   : > { %v421_v6 = vmul.f32 %v2054_v37, %v370_v5  ;;  %v456_v7 = vadd.f32 %v2070_v45, %v436_v3  ;;  %v280_v9 = vpop.permute.xlu0 %279 }
  0xae   : > { %v337_v11 = vmul.f32 %v2065_v40, %v280_v9  ;;  %v1762_v12 = vpop.eup %1761 }
  0xaf   : > { %v437_v8 = vadd.f32 %v421_v6, %v336_v4  ;;  %1769 = vtanh.f32 %v456_v7 }
  0xb0   : > { %v438_v17 = vadd.f32 %v422_v10, %v337_v11 }
  0xb1   : > { %v457_v13 = vadd.f32 %v2070_v45, %v437_v8  ;;  %v285_v14 = vpop.permute.xlu1 %284  ;;  %v295_v31 = vpop.permute.xlu0 %294 }
  0xb2   : > { %v1764_v15 = vpop.eup %1763  ;;  %v338_v21 = vmul.f32 %v2065_v40, %v285_v14  ;;  %v458_v24 = vadd.f32 %v2070_v45, %v438_v17  ;;  %v340_v42 = vmul.f32 %v2065_v40, %v295_v31 }
  0xb3   : > { %1771 = vtanh.f32 %v457_v13  ;;  %v484_v16 = vpack.c.bf16 %v1764_v15, %v1762_v12  ;;  %v1766_v18 = vpop.eup %1765 }
  0xb4   : > { %1773 = vtanh.f32 %v458_v24 }
  0xb5   : > { %1589 = vmatprep.mubr.bf16.mxu0 %v484_v16  ;;  %v300_v43 = vpop.permute.xlu0 %299 }
  0xb6   : > { %v1768_v19 = vpop.eup %1767  ;;  %v378_v20 = vpop.permute.xlu1 %377  ;;  %v341_v51 = vmul.f32 %v2065_v40, %v300_v43  ;;  %v510_v43 = vsub.s32 1, %v2047_v34 }
  0xb7   : > { %v423_v22 = vmul.f32 %v2054_v37, %v378_v20  ;;  %v485_v23 = vpack.c.bf16 %v1766_v18, %v1768_v19 }
  0xb8   : > { %v442_v55 = vadd.f32 %v426_v50, %v341_v51 }
  0xb9   : > { %v439_v25 = vadd.f32 %v423_v22, %v338_v21  ;;  %1590 = vmatmul.mubr.bf16.vlgmr.msra.gmra.mrb[0].mxu0 %v485_v23  ;;  %v1770_v28 = vpop.eup %1769  ;;  %v315_v60 = vpop.permute.xlu0 %314 }
  0xba   : > { %v462_v59 = vadd.f32 %v2070_v45, %v442_v55  ;;  %v344_v8 = vmul.f32 %v2065_v40, %v315_v60 }
  0xbb   : > { %v459_v26 = vadd.f32 %v2070_v45, %v439_v25  ;;  %v290_v27 = vpop.permute.xlu1 %289 }
  0xbc   : > { %v339_v33 = vmul.f32 %v2065_v40, %v290_v27 }
  0xbd   : > { %v1772_v29 = vpop.eup %1771  ;;  %1775 = vtanh.f32 %v459_v26  ;;  %v320_v2 = vpop.permute.xlu0 %319 }
  0xbe   : > { %v486_v30 = vpack.c.bf16 %v1772_v29, %v1770_v28  ;;  %v1774_v46 = vpop.eup %1773  ;;  %v345_v15 = vmul.f32 %v2065_v40, %v320_v2 }
  0xc0   : > { %1593 = vmatprep.mubr.bf16.mxu0 %v486_v30  ;;  %v382_v32 = vpop.permute.xlu1 %381 }
  0xc1   : > { %v424_v36 = vmul.f32 %v2054_v37, %v382_v32 }
  0xc2   : > { %v406_v9 = vpop.permute.xlu0 %405 }
  0xc3   : > { %v440_v38 = vadd.f32 %v424_v36, %v339_v33  ;;  %v430_v16 = vmul.f32 %v2054_v37, %v406_v9  ;;  %v1743_v33 = vld [vmem:[%s2331_s2 + $0x70] sm:$0xff]   ;;  %v1744_v36 = vld [vmem:[%s2331_s2 + $0x78] sm:$0xff]  }
  0xc4   : > { %v386_v41 = vpop.permute.xlu1 %385 }
  0xc5   : > { %v425_v44 = vmul.f32 %v2054_v37, %v386_v41  ;;  %v460_v47 = vadd.f32 %v2070_v45, %v440_v38  ;;  %v446_v20 = vadd.f32 %v430_v16, %v345_v15  ;;  %v1745_v38 = vld [vmem:[%s2331_s2 + $0x80] sm:$0xff]   ;;  %v1746_v41 = vld [vmem:[%s2331_s2 + $0x88] sm:$0xff]  }
  0xc6   : > { %1637 = vmatprep.subr.bf16.mxu0 %v1745_v38 }
  0xc7   : > { %v1776_v48 = vpop.eup %1775  ;;  %v441_v49 = vadd.f32 %v425_v44, %v340_v42  ;;  %1777 = vtanh.f32 %v460_v47  ;;  %v466_v24 = vadd.f32 %v2070_v45, %v446_v20  ;;  %1638 = vmatpush3.bf16.msra.mxu0 %v1745_v38  ;;  %v1747_v42 = vld [vmem:[%s2331_s2 + $0x90] sm:$0xff]   ;;  %v2145_v44 = vrot.slane %v2060_v39, %v510_v43  ;;  %v1749_v38 = vld [vmem:[%s2331_s2 + $0xa0] sm:$0xff]   ;;  %v1752_v43 = vld [vmem:[%s2331_s2 + $0xb8] sm:$0xff]  }
  0xc8   : > { %v487_v52 = vpack.c.bf16 %v1776_v48, %v1774_v46  ;;  %1639 = vmatprep.subr.bf16.mxu0 %v1746_v41 }
  0xc9   : > { %v461_v53 = vadd.f32 %v2070_v45, %v441_v49  ;;  %v305_v54 = vpop.permute.xlu1 %304 }
  0xca   : > { %1594 = vmatmul.mubr.bf16.gmra.mrb[4].mxu0 %v487_v52  ;;  %v342_v57 = vmul.f32 %v2065_v40, %v305_v54 }
  0xcb   : > { %1779 = vtanh.f32 %v461_v53  ;;  %1640 = vmatpush3.bf16.msra.mxu0 %v1746_v41  ;;  %v1750_v41 = vld [vmem:[%s2331_s2 + $0xa8] sm:$0xff]  }
  0xcc   : > { %1781 = vtanh.f32 %v462_v59  ;;  %1641 = vmatprep.subr.bf16.mxu0 %v1747_v42 }
  0xce   : > { %v394_v56 = vpop.permute.xlu1 %393 }
  0xcf   : > { %v427_v58 = vmul.f32 %v2054_v37, %v394_v56  ;;  %1642 = vmatpush3.bf16.msra.mxu0 %v1747_v42  ;;  %v1751_v42 = vld [vmem:[%s2331_s2 + $0xb0] sm:$0xff]  }
  0xd1   : > { %v443_v61 = vadd.f32 %v427_v58, %v342_v57  ;;  %v1778_v63 = vpop.eup %1777 }
  0xd3   : > { %v463_v35 = vadd.f32 %v2070_v45, %v443_v61  ;;  %v310_v62 = vpop.permute.xlu1 %309 }
  0xd4   : > { %v343_v4 = vmul.f32 %v2065_v40, %v310_v62 }
  0xd5   : > { %v1780_v0 = vpop.eup %1779  ;;  %1783 = vtanh.f32 %v463_v35 }
  0xd6   : > { %v488_v1 = vpack.c.bf16 %v1780_v0, %v1778_v63  ;;  %v1782_v11 = vpop.eup %1781 }
  0xd8   : > { %1597 = vmatprep.mubr.bf16.mxu0 %v488_v1  ;;  %v398_v3 = vpop.permute.xlu1 %397 }
  0xd9   : > { %v428_v5 = vmul.f32 %v2054_v37, %v398_v3 }
  0xdb   : > { %v444_v6 = vadd.f32 %v428_v5, %v343_v4 }
  0xdc   : > { %v402_v7 = vpop.permute.xlu1 %401 }
  0xdd   : > { %v429_v10 = vmul.f32 %v2054_v37, %v402_v7  ;;  %v464_v12 = vadd.f32 %v2070_v45, %v444_v6 }
  0xdf   : > { %v1784_v13 = vpop.eup %1783  ;;  %v445_v14 = vadd.f32 %v429_v10, %v344_v8  ;;  %1785 = vtanh.f32 %v464_v12 }
  0xe0   : > { %v489_v17 = vpack.c.bf16 %v1784_v13, %v1782_v11 }
  0xe1   : > { %v465_v18 = vadd.f32 %v2070_v45, %v445_v14  ;;  %v325_v19 = vpop.permute.xlu1 %324 }
  0xe2   : > { %1598 = vmatmul.mubr.bf16.gmra.mrb[8].mxu0 %v489_v17  ;;  %v346_v22 = vmul.f32 %v2065_v40, %v325_v19  ;;  %v1740_v40 = vld [vmem:[%s2331_s2 + $0x58] sm:$0xff]  }
  0xe3   : > { %1787 = vtanh.f32 %v465_v18  ;;  %1611 = vmatprep.subr.bf16.mxu1 %v1740_v40 }
  0xe4   : > { %1789 = vtanh.f32 %v466_v24  ;;  %1612 = vmatpush3.bf16.msra.mxu1 %v1740_v40 }
  0xe6   : > { %v410_v21 = vpop.permute.xlu1 %409 }
  0xe7   : > { %v431_v23 = vmul.f32 %v2054_v37, %v410_v21  ;;  %v1741_v37 = vld [vmem:[%s2331_s2 + $0x60] sm:$0xff]  }
  0xe8   : > { %1613 = vmatprep.subr.bf16.mxu1 %v1741_v37 }
  0xe9   : > { %v447_v25 = vadd.f32 %v431_v23, %v346_v22  ;;  %v1786_v27 = vpop.eup %1785  ;;  %1614 = vmatpush3.bf16.msra.mxu1 %v1741_v37 }
  0xeb   : > { %v467_v26 = vadd.f32 %v2070_v45, %v447_v25  ;;  %v1742_v45 = vld [vmem:[%s2331_s2 + $0x68] sm:$0xff]  }
  0xec   : > { %1615 = vmatprep.subr.bf16.mxu1 %v1742_v45 }
  0xed   : > { %v1788_v28 = vpop.eup %1787  ;;  %1791 = vtanh.f32 %v467_v26  ;;  %1616 = vmatpush3.bf16.msra.mxu1 %v1742_v45 }
  0xee   : > { %v490_v29 = vpack.c.bf16 %v1788_v28, %v1786_v27  ;;  %v1790_v30 = vpop.eup %1789  ;;  %1617 = vmatprep.subr.bf16.mxu1 %v1743_v33 }
  0xf0   : > { %1601 = vmatprep.mubr.bf16.mxu0 %v490_v29 }
  0xf1   : > { %1618 = vmatpush3.bf16.msra.mxu1 %v1743_v33 }
  0xf2   : > { %1619 = vmatprep.subr.bf16.mxu1 %v1744_v36 }
  0xf5   : > { %1620 = vmatpush3.bf16.msra.mxu1 %v1744_v36  ;;  %v1748_v36 = vld [vmem:[%s2331_s2 + $0x98] sm:$0xff]  }
  0xf6   : > { %1643 = vmatprep.subr.bf16.mxu0 %v1748_v36 }
  0xf7   : > { %v1792_v31 = vpop.eup %1791  ;;  %1644 = vmatpush3.bf16.msra.mxu0 %v1748_v36 }
  0xf8   : > { %v491_v32 = vpack.c.bf16 %v1792_v31, %v1790_v30  ;;  %1645 = vmatprep.subr.bf16.mxu0 %v1749_v38 }
  0xfa   : > { %1602 = vmatmul.mubr.bf16.gmra.mrb[12].mxu0 %v491_v32 }
  0xfb   : > { %1646 = vmatpush3.bf16.msra.mxu0 %v1749_v38 }
  0xfc   : > { %1647 = vmatprep.subr.bf16.mxu0 %v1750_v41 }
  0xff   : > { %1648 = vmatpush3.bf16.msra.mxu0 %v1750_v41 }
 0x100   : > { %1649 = vmatprep.subr.bf16.mxu0 %v1751_v42 }
 0x103   : > { %1650 = vmatpush3.bf16.msra.mxu0 %v1751_v42 }
 0x104   : > { %1651 = vmatprep.subr.bf16.mxu0 %v1752_v43 }
 0x107   : > { %1652 = vmatpush3.bf16.msra.mxu0 %v1752_v43  ;;  %v1756_v43 = vld [vmem:[%s2331_s2 + $0xd8] sm:$0xff]  }
 0x18c   : > { %v1591_v46 = vpop.f32.mrb[0].mxu0 }
 0x18d   : > { %v603_v47 = vadd.f32 %v1591_v46, %v2145_v44  ;;  %v594_v48 = vpop.f32.mrb[1].mxu0  ;;  %v1754_v46 = vld [vmem:[%s2331_s2 + $0xc8] sm:$0xff]  }
 0x18e   : > { %v595_v49 = vadd.f32 %v594_v48, %v2145_v44  ;;  %v1592_v50 = vpop.f32.mrb[2].mxu0  ;;  %v700_v48 = vsub.s32 2, %v2047_v34 }
 0x18f   : > { %1793 = vtanh.f32 %v603_v47  ;;  %v606_v51 = vadd.f32 %v1592_v50, %v2145_v44  ;;  %v597_v52 = vpop.f32.mrb[3].mxu0  ;;  %v1755_v47 = vld [vmem:[%s2331_s2 + $0xd0] sm:$0xff]  }
 0x190   : > { %1795 = vtanh.f32 %v595_v49  ;;  %v598_v53 = vadd.f32 %v597_v52, %v2145_v44  ;;  %v2189_v49 = vrot.slane %v2060_v39, %v700_v48  ;;  %v1760_v48 = vld [vmem:[%s2331_s2 + $0xf8] sm:$0xff]  }
 0x191   : > { %1797 = vtanh.f32 %v606_v51 }
 0x192   : > { %1799 = vtanh.f32 %v598_v53 }
 0x199   : > { %v1794_v54 = vpop.eup %1793 }
 0x19a   : > { %v1796_v55 = vpop.eup %1795 }
 0x19b   : > { %v1798_v56 = vpop.eup %1797 }
 0x19c   : > { %v1800_v57 = vpop.eup %1799  ;;  %v674_v58 = vpack.c.bf16 %v1798_v56, %v1794_v54 }
 0x19d   : > { %v1595_v59 = vpop.f32.mrb[4].mxu0  ;;  %v673_v60 = vpack.c.bf16 %v1800_v57, %v1796_v55 }
 0x19e   : > { %v619_v61 = vadd.f32 %v1595_v59, %v2145_v44  ;;  %v610_v35 = vpop.f32.mrb[5].mxu0 }
 0x19f   : > { %v611_v62 = vadd.f32 %v610_v35, %v2145_v44  ;;  %v1596_v63 = vpop.f32.mrb[6].mxu0  ;;  %1621 = vmatprep.mubr.bf16.mxu1 %v673_v60 }
 0x1a0   : > { %1801 = vtanh.f32 %v619_v61  ;;  %v622_v0 = vadd.f32 %v1596_v63, %v2145_v44  ;;  %v613_v1 = vpop.f32.mrb[7].mxu0  ;;  %1622 = vmatmul.mubr.bf16.vlgmr.msra.gmra.mrb[0].mxu1 %v674_v58 }
 0x1a1   : > { %1803 = vtanh.f32 %v611_v62  ;;  %v614_v2 = vadd.f32 %v613_v1, %v2145_v44 }
 0x1a2   : > { %1805 = vtanh.f32 %v622_v0 }
 0x1a3   : > { %1807 = vtanh.f32 %v614_v2 }
 0x1aa   : > { %v1802_v3 = vpop.eup %1801 }
 0x1ab   : > { %v1804_v4 = vpop.eup %1803 }
 0x1ac   : > { %v1806_v5 = vpop.eup %1805 }
 0x1ad   : > { %v1808_v6 = vpop.eup %1807  ;;  %v676_v7 = vpack.c.bf16 %v1806_v5, %v1802_v3 }
 0x1ae   : > { %v675_v8 = vpack.c.bf16 %v1808_v6, %v1804_v4 }
 0x1b0   : > { %1625 = vmatprep.mubr.bf16.mxu1 %v675_v8 }
 0x1b1   : > { %1626 = vmatmul.mubr.bf16.gmra.mrb[4].mxu1 %v676_v7 }
 0x1b5   : > { %v1599_v9 = vpop.f32.mrb[8].mxu0 }
 0x1b6   : > { %v635_v10 = vadd.f32 %v1599_v9, %v2145_v44  ;;  %v626_v11 = vpop.f32.mrb[9].mxu0 }
 0x1b7   : > { %v627_v12 = vadd.f32 %v626_v11, %v2145_v44  ;;  %v1600_v13 = vpop.f32.mrb[10].mxu0 }
 0x1b8   : > { %1809 = vtanh.f32 %v635_v10  ;;  %v638_v14 = vadd.f32 %v1600_v13, %v2145_v44  ;;  %v629_v15 = vpop.f32.mrb[11].mxu0 }
 0x1b9   : > { %1811 = vtanh.f32 %v627_v12  ;;  %v630_v16 = vadd.f32 %v629_v15, %v2145_v44 }
 0x1ba   : > { %1813 = vtanh.f32 %v638_v14 }
 0x1bb   : > { %1815 = vtanh.f32 %v630_v16 }
 0x1c2   : > { %v1810_v17 = vpop.eup %1809 }
 0x1c3   : > { %v1812_v18 = vpop.eup %1811 }
 0x1c4   : > { %v1814_v19 = vpop.eup %1813 }
 0x1c5   : > { %v1816_v20 = vpop.eup %1815  ;;  %v678_v21 = vpack.c.bf16 %v1814_v19, %v1810_v17 }
 0x1c6   : > { %v677_v22 = vpack.c.bf16 %v1816_v20, %v1812_v18 }
 0x1c8   : > { %1629 = vmatprep.mubr.bf16.mxu1 %v677_v22 }
 0x1c9   : > { %1630 = vmatmul.mubr.bf16.gmra.mrb[8].mxu1 %v678_v21 }
 0x1cd   : > { %v1603_v23 = vpop.f32.mrb[12].mxu0 }
 0x1ce   : > { %v651_v24 = vadd.f32 %v1603_v23, %v2145_v44  ;;  %v642_v25 = vpop.f32.mrb[13].mxu0 }
 0x1cf   : > { %v643_v26 = vadd.f32 %v642_v25, %v2145_v44  ;;  %v1604_v27 = vpop.f32.mrb[14].mxu0 }
 0x1d0   : > { %1817 = vtanh.f32 %v651_v24  ;;  %v654_v28 = vadd.f32 %v1604_v27, %v2145_v44  ;;  %v645_v29 = vpop.f32.mrb[15].mxu0 }
 0x1d1   : > { %1819 = vtanh.f32 %v643_v26  ;;  %v646_v30 = vadd.f32 %v645_v29, %v2145_v44  ;;  %v1753_v44 = vld [vmem:[%s2331_s2 + $0xc0] sm:$0xff]  }
 0x1d2   : > { %1821 = vtanh.f32 %v654_v28  ;;  %1669 = vmatprep.subr.bf16.mxu1 %v1753_v44 }
 0x1d3   : > { %1823 = vtanh.f32 %v646_v30  ;;  %1670 = vmatpush3.bf16.msra.mxu1 %v1753_v44  ;;  %v1757_v44 = vld [vmem:[%s2331_s2 + $0xe0] sm:$0xff]  }
 0x1d4   : > { %1671 = vmatprep.subr.bf16.mxu1 %v1754_v46 }
 0x1d7   : > { %1672 = vmatpush3.bf16.msra.mxu1 %v1754_v46  ;;  %v1758_v46 = vld [vmem:[%s2331_s2 + $0xe8] sm:$0xff]  }
 0x1d8   : > { %1673 = vmatprep.subr.bf16.mxu1 %v1755_v47 }
 0x1da   : > { %v1818_v31 = vpop.eup %1817 }
 0x1db   : > { %v1820_v32 = vpop.eup %1819  ;;  %1674 = vmatpush3.bf16.msra.mxu1 %v1755_v47  ;;  %v1759_v47 = vld [vmem:[%s2331_s2 + $0xf0] sm:$0xff]  }
 0x1dc   : > { %v1822_v40 = vpop.eup %1821  ;;  %1675 = vmatprep.subr.bf16.mxu1 %v1756_v43 }
 0x1dd   : > { %v1824_v37 = vpop.eup %1823  ;;  %v680_v45 = vpack.c.bf16 %v1822_v40, %v1818_v31 }
 0x1de   : > { %v679_v33 = vpack.c.bf16 %v1824_v37, %v1820_v32 }
 0x1df   : > { %1676 = vmatpush3.bf16.msra.mxu1 %v1756_v43 }
 0x1e0   : > { %1633 = vmatprep.mubr.bf16.mxu1 %v679_v33  ;;  %1677 = vmatprep.subr.bf16.mxu1 %v1757_v44 }
 0x1e1   : > { %1634 = vmatmul.mubr.bf16.gmra.mrb[12].mxu1 %v680_v45 }
 0x1e3   : > { %1678 = vmatpush3.bf16.msra.mxu1 %v1757_v44  ;;  %v1080_v44 = vsub.s32 4, %v2047_v34 }
 0x1e4   : > { %1679 = vmatprep.subr.bf16.mxu1 %v1758_v46 }
 0x1e7   : > { %1680 = vmatpush3.bf16.msra.mxu1 %v1758_v46  ;;  %v2244_v46 = vrot.slane %v2060_v39, %v1080_v44 }
 0x1e8   : > { %1681 = vmatprep.subr.bf16.mxu1 %v1759_v47 }
 0x1eb   : > { %1682 = vmatpush3.bf16.msra.mxu1 %v1759_v47 }
 0x1ec   : > { %1683 = vmatprep.subr.bf16.mxu1 %v1760_v48 }
 0x1ef   : > { %1684 = vmatpush3.bf16.msra.mxu1 %v1760_v48 }
 0x273   : > { %v1623_v50 = vpop.f32.mrb[0].mxu1 }
 0x274   : > { %v793_v51 = vadd.f32 %v1623_v50, %v2189_v49  ;;  %v784_v52 = vpop.f32.mrb[1].mxu1 }
 0x275   : > { %v785_v53 = vadd.f32 %v784_v52, %v2189_v49  ;;  %v1624_v54 = vpop.f32.mrb[2].mxu1 }
 0x276   : > { %1825 = vtanh.f32 %v793_v51  ;;  %v796_v55 = vadd.f32 %v1624_v54, %v2189_v49  ;;  %v787_v56 = vpop.f32.mrb[3].mxu1 }
 0x277   : > { %1827 = vtanh.f32 %v785_v53  ;;  %v788_v57 = vadd.f32 %v787_v56, %v2189_v49 }
 0x278   : > { %1829 = vtanh.f32 %v796_v55 }
 0x279   : > { %1831 = vtanh.f32 %v788_v57 }
 0x280   : > { %v1826_v58 = vpop.eup %1825 }
 0x281   : > { %v1828_v59 = vpop.eup %1827 }
 0x282   : > { %v1830_v60 = vpop.eup %1829 }
 0x283   : > { %v1832_v61 = vpop.eup %1831  ;;  %v864_v35 = vpack.c.bf16 %v1830_v60, %v1826_v58 }
 0x284   : > { %v1627_v62 = vpop.f32.mrb[4].mxu1  ;;  %v863_v63 = vpack.c.bf16 %v1832_v61, %v1828_v59 }
 0x285   : > { %v809_v0 = vadd.f32 %v1627_v62, %v2189_v49  ;;  %v800_v1 = vpop.f32.mrb[5].mxu1 }
 0x286   : > { %v801_v2 = vadd.f32 %v800_v1, %v2189_v49  ;;  %v1628_v3 = vpop.f32.mrb[6].mxu1  ;;  %1653 = vmatprep.mubr.bf16.mxu0 %v863_v63 }
 0x287   : > { %1833 = vtanh.f32 %v809_v0  ;;  %v812_v4 = vadd.f32 %v1628_v3, %v2189_v49  ;;  %v803_v5 = vpop.f32.mrb[7].mxu1  ;;  %1654 = vmatmul.mubr.bf16.vlgmr.msra.gmra.mrb[16].mxu0 %v864_v35 }
 0x288   : > { %1835 = vtanh.f32 %v801_v2  ;;  %v804_v6 = vadd.f32 %v803_v5, %v2189_v49 }
 0x289   : > { %1837 = vtanh.f32 %v812_v4 }
 0x28a   : > { %1839 = vtanh.f32 %v804_v6 }
 0x291   : > { %v1834_v7 = vpop.eup %1833 }
 0x292   : > { %v1836_v8 = vpop.eup %1835 }
 0x293   : > { %v1838_v9 = vpop.eup %1837 }
 0x294   : > { %v1840_v10 = vpop.eup %1839  ;;  %v866_v11 = vpack.c.bf16 %v1838_v9, %v1834_v7 }
 0x295   : > { %v865_v12 = vpack.c.bf16 %v1840_v10, %v1836_v8 }
 0x297   : > { %1657 = vmatprep.mubr.bf16.mxu0 %v865_v12 }
 0x298   : > { %1658 = vmatmul.mubr.bf16.gmra.mrb[20].mxu0 %v866_v11 }
 0x29c   : > { %v1631_v13 = vpop.f32.mrb[8].mxu1 }
 0x29d   : > { %v825_v14 = vadd.f32 %v1631_v13, %v2189_v49  ;;  %v816_v15 = vpop.f32.mrb[9].mxu1 }
 0x29e   : > { %v817_v16 = vadd.f32 %v816_v15, %v2189_v49  ;;  %v1632_v17 = vpop.f32.mrb[10].mxu1 }
 0x29f   : > { %1841 = vtanh.f32 %v825_v14  ;;  %v828_v18 = vadd.f32 %v1632_v17, %v2189_v49  ;;  %v819_v19 = vpop.f32.mrb[11].mxu1 }
 0x2a0   : > { %1843 = vtanh.f32 %v817_v16  ;;  %v820_v20 = vadd.f32 %v819_v19, %v2189_v49 }
 0x2a1   : > { %1845 = vtanh.f32 %v828_v18 }
 0x2a2   : > { %1847 = vtanh.f32 %v820_v20 }
 0x2a9   : > { %v1842_v21 = vpop.eup %1841 }
 0x2aa   : > { %v1844_v22 = vpop.eup %1843 }
 0x2ab   : > { %v1846_v23 = vpop.eup %1845 }
 0x2ac   : > { %v1848_v24 = vpop.eup %1847  ;;  %v868_v25 = vpack.c.bf16 %v1846_v23, %v1842_v21 }
 0x2ad   : > { %v867_v26 = vpack.c.bf16 %v1848_v24, %v1844_v22 }
 0x2af   : > { %1661 = vmatprep.mubr.bf16.mxu0 %v867_v26 }
 0x2b0   : > { %1662 = vmatmul.mubr.bf16.gmra.mrb[24].mxu0 %v868_v25 }
 0x2b4   : > { %v1635_v27 = vpop.f32.mrb[12].mxu1 }
 0x2b5   : > { %v841_v28 = vadd.f32 %v1635_v27, %v2189_v49  ;;  %v832_v29 = vpop.f32.mrb[13].mxu1 }
 0x2b6   : > { %v833_v30 = vadd.f32 %v832_v29, %v2189_v49  ;;  %v1636_v31 = vpop.f32.mrb[14].mxu1 }
 0x2b7   : > { %1849 = vtanh.f32 %v841_v28  ;;  %v844_v32 = vadd.f32 %v1636_v31, %v2189_v49  ;;  %v835_v40 = vpop.f32.mrb[15].mxu1 }
 0x2b8   : > { %1851 = vtanh.f32 %v833_v30  ;;  %v836_v37 = vadd.f32 %v835_v40, %v2189_v49  ;;  %v890_v49 = vsub.s32 3, %v2047_v34 }
 0x2b9   : > { %1853 = vtanh.f32 %v844_v32 }
 0x2ba   : > { %1855 = vtanh.f32 %v836_v37  ;;  %v2224_v50 = vrot.slane %v2060_v39, %v890_v49 }
 0x2c1   : > { %v1850_v45 = vpop.eup %1849 }
 0x2c2   : > { %v1852_v33 = vpop.eup %1851 }
 0x2c3   : > { %v1854_v36 = vpop.eup %1853 }
 0x2c4   : > { %v1856_v38 = vpop.eup %1855  ;;  %v870_v41 = vpack.c.bf16 %v1854_v36, %v1850_v45 }
 0x2c5   : > { %v869_v42 = vpack.c.bf16 %v1856_v38, %v1852_v33 }
 0x2c7   : > { %1665 = vmatprep.mubr.bf16.mxu0 %v869_v42 }
 0x2c8   : > { %1666 = vmatmul.mubr.bf16.gmra.mrb[28].mxu0 %v870_v41 }
 0x35a   : > { %v1655_v51 = vpop.f32.mrb[16].mxu0 }
 0x35b   : > { %v983_v52 = vadd.f32 %v1655_v51, %v2224_v50  ;;  %v974_v53 = vpop.f32.mrb[17].mxu0 }
 0x35c   : > { %v975_v54 = vadd.f32 %v974_v53, %v2224_v50  ;;  %v1656_v55 = vpop.f32.mrb[18].mxu0 }
 0x35d   : > { %1857 = vtanh.f32 %v983_v52  ;;  %v986_v56 = vadd.f32 %v1656_v55, %v2224_v50  ;;  %v977_v57 = vpop.f32.mrb[19].mxu0 }
 0x35e   : > { %1859 = vtanh.f32 %v975_v54  ;;  %v978_v58 = vadd.f32 %v977_v57, %v2224_v50 }
 0x35f   : > { %1861 = vtanh.f32 %v986_v56 }
 0x360   : > { %1863 = vtanh.f32 %v978_v58 }
 0x367   : > { %v1858_v59 = vpop.eup %1857 }
 0x368   : > { %v1860_v60 = vpop.eup %1859 }
 0x369   : > { %v1862_v61 = vpop.eup %1861 }
 0x36a   : > { %v1864_v35 = vpop.eup %1863  ;;  %v1054_v62 = vpack.c.bf16 %v1862_v61, %v1858_v59 }
 0x36b   : > { %v1659_v63 = vpop.f32.mrb[20].mxu0  ;;  %v1053_v0 = vpack.c.bf16 %v1864_v35, %v1860_v60  ;;  %v2253_v60 = vld [vmem:[%s2332_s3] ss:$0 sm:$0xff] }
 0x36c   : > { %v999_v1 = vadd.f32 %v1659_v63, %v2224_v50  ;;  %v990_v2 = vpop.f32.mrb[21].mxu0 }
 0x36d   : > { %v991_v3 = vadd.f32 %v990_v2, %v2224_v50  ;;  %v1660_v4 = vpop.f32.mrb[22].mxu0  ;;  %1685 = vmatprep.mubr.bf16.mxu1 %v1053_v0 }
 0x36e   : > { %1865 = vtanh.f32 %v999_v1  ;;  %v1002_v5 = vadd.f32 %v1660_v4, %v2224_v50  ;;  %v993_v6 = vpop.f32.mrb[23].mxu0  ;;  %1686 = vmatmul.mubr.bf16.vlgmr.msra.gmra.mrb[16].mxu1 %v1054_v62 }
 0x36f   : > { %1867 = vtanh.f32 %v991_v3  ;;  %v994_v7 = vadd.f32 %v993_v6, %v2224_v50 }
 0x370   : > { %1869 = vtanh.f32 %v1002_v5 }
 0x371   : > { %1871 = vtanh.f32 %v994_v7 }
 0x378   : > { %v1866_v8 = vpop.eup %1865 }
 0x379   : > { %v1868_v9 = vpop.eup %1867 }
 0x37a   : > { %v1870_v10 = vpop.eup %1869 }
 0x37b   : > { %v1872_v11 = vpop.eup %1871  ;;  %v1056_v12 = vpack.c.bf16 %v1870_v10, %v1866_v8 }
 0x37c   : > { %v1055_v13 = vpack.c.bf16 %v1872_v11, %v1868_v9 }
 0x37e   : > { %1689 = vmatprep.mubr.bf16.mxu1 %v1055_v13 }
 0x37f   : > { %1690 = vmatmul.mubr.bf16.gmra.mrb[20].mxu1 %v1056_v12 }
 0x383   : > { %v1663_v14 = vpop.f32.mrb[24].mxu0 }
 0x384   : > { %v1015_v15 = vadd.f32 %v1663_v14, %v2224_v50  ;;  %v1006_v16 = vpop.f32.mrb[25].mxu0 }
 0x385   : > { %v1007_v17 = vadd.f32 %v1006_v16, %v2224_v50  ;;  %v1664_v18 = vpop.f32.mrb[26].mxu0 }
 0x386   : > { %1873 = vtanh.f32 %v1015_v15  ;;  %v1018_v19 = vadd.f32 %v1664_v18, %v2224_v50  ;;  %v1009_v20 = vpop.f32.mrb[27].mxu0 }
 0x387   : > { %1875 = vtanh.f32 %v1007_v17  ;;  %v1010_v21 = vadd.f32 %v1009_v20, %v2224_v50 }
 0x388   : > { %1877 = vtanh.f32 %v1018_v19 }
 0x389   : > { %1879 = vtanh.f32 %v1010_v21 }
 0x390   : > { %v1874_v22 = vpop.eup %1873 }
 0x391   : > { %v1876_v23 = vpop.eup %1875 }
 0x392   : > { %v1878_v24 = vpop.eup %1877 }
 0x393   : > { %v1880_v25 = vpop.eup %1879  ;;  %v1058_v26 = vpack.c.bf16 %v1878_v24, %v1874_v22 }
 0x394   : > { %v1057_v27 = vpack.c.bf16 %v1880_v25, %v1876_v23 }
 0x396   : > { %1693 = vmatprep.mubr.bf16.mxu1 %v1057_v27 }
 0x397   : > { %1694 = vmatmul.mubr.bf16.gmra.mrb[24].mxu1 %v1058_v26 }
 0x39b   : > { %v1667_v28 = vpop.f32.mrb[28].mxu0 }
 0x39c   : > { %v1031_v29 = vadd.f32 %v1667_v28, %v2224_v50  ;;  %v1022_v30 = vpop.f32.mrb[29].mxu0 }
 0x39d   : > { %v1023_v31 = vadd.f32 %v1022_v30, %v2224_v50  ;;  %v1668_v32 = vpop.f32.mrb[30].mxu0 }
 0x39e   : > { %1881 = vtanh.f32 %v1031_v29  ;;  %v1034_v40 = vadd.f32 %v1668_v32, %v2224_v50  ;;  %v1025_v37 = vpop.f32.mrb[31].mxu0 }
 0x39f   : > { %1883 = vtanh.f32 %v1023_v31  ;;  %v1026_v45 = vadd.f32 %v1025_v37, %v2224_v50 }
 0x3a0   : > { %1885 = vtanh.f32 %v1034_v40 }
 0x3a1   : > { %1887 = vtanh.f32 %v1026_v45 }
 0x3a8   : > { %v1882_v33 = vpop.eup %1881 }
 0x3a9   : > { %v1884_v36 = vpop.eup %1883 }
 0x3aa   : > { %v1886_v38 = vpop.eup %1885 }
 0x3ab   : > { %v1888_v41 = vpop.eup %1887  ;;  %v1060_v42 = vpack.c.bf16 %v1886_v38, %v1882_v33 }
 0x3ac   : > { %v1059_v43 = vpack.c.bf16 %v1888_v41, %v1884_v36 }
 0x3ae   : > { %1697 = vmatprep.mubr.bf16.mxu1 %v1059_v43 }
 0x3af   : > { %1698 = vmatmul.mubr.bf16.gmra.mrb[28].mxu1 %v1060_v42 }
 0x441   : > { %v1687_v47 = vpop.f32.mrb[16].mxu1 }
 0x442   : > { %v1173_v48 = vadd.f32 %v1687_v47, %v2244_v46  ;;  %v1164_v49 = vpop.f32.mrb[17].mxu1 }
 0x443   : > { %v1165_v50 = vadd.f32 %v1164_v49, %v2244_v46  ;;  %v1688_v51 = vpop.f32.mrb[18].mxu1 }
 0x444   : > { %1889 = vtanh.f32 %v1173_v48  ;;  %v1176_v52 = vadd.f32 %v1688_v51, %v2244_v46  ;;  %v1167_v53 = vpop.f32.mrb[19].mxu1 }
 0x445   : > { %1891 = vtanh.f32 %v1165_v50  ;;  %v1168_v54 = vadd.f32 %v1167_v53, %v2244_v46 }
 0x446   : > { %1893 = vtanh.f32 %v1176_v52 }
 0x447   : > { %1895 = vtanh.f32 %v1168_v54 }
 0x44e   : > { %v1890_v55 = vpop.eup %1889 }
 0x44f   : > { %v1892_v56 = vpop.eup %1891 }
 0x450   : > { %v1894_v39 = vpop.eup %1893 }
 0x451   : > { %v1896_v57 = vpop.eup %1895  ;;  %v1244_v58 = vpack.c.bf16 %v1894_v39, %v1890_v55 }
 0x452   : > { %v1691_v59 = vpop.f32.mrb[20].mxu1  ;;  %v1243_v61 = vpack.c.bf16 %v1896_v57, %v1892_v56 }
 0x453   : > { %v1189_v35 = vadd.f32 %v1691_v59, %v2244_v46  ;;  %v1180_v62 = vpop.f32.mrb[21].mxu1  ;;  %v1254_v63 = vunpack.c.h.bf16 %v1244_v58  ;;  %v1253_v0 = vunpack.c.l.bf16 %v1244_v58 }
 0x454   : > { %v1181_v1 = vadd.f32 %v1180_v62, %v2244_v46  ;;  %v1692_v2 = vpop.f32.mrb[22].mxu1  ;;  %v1252_v3 = vunpack.c.h.bf16 %v1243_v61  ;;  %v1251_v4 = vunpack.c.l.bf16 %v1243_v61 }
 0x455   : > { %1897 = vtanh.f32 %v1189_v35  ;;  %v1192_v5 = vadd.f32 %v1692_v2, %v2244_v46  ;;  %v1183_v6 = vpop.f32.mrb[23].mxu1  ;;  %v1277_v7 = vmul.f32 %v2253_v60, %v1254_v63  ;;  %v1276_v8 = vmul.f32 %v2253_v60, %v1253_v0 }
 0x456   : > { %1899 = vtanh.f32 %v1181_v1  ;;  %v1184_v9 = vadd.f32 %v1183_v6, %v2244_v46  ;;  %v1275_v10 = vmul.f32 %v2253_v60, %v1252_v3  ;;  %v1274_v11 = vmul.f32 %v2253_v60, %v1251_v4 }
 0x457   : > { %1901 = vtanh.f32 %v1192_v5  ;;  %1296 = vadd.xlane.f32.xlu1 %v1277_v7  ;;  %1294 = vadd.xlane.f32.xlu0 %v1276_v8  ;;  %v1324_v8 = vsub.s32 5, %v2047_v34 }
 0x458   : > { %1903 = vtanh.f32 %v1184_v9  ;;  %v1921_v9 = vld [vmem:[%s2333_s4] sm:$0x3f] }
 0x45b   : > { %1292 = vadd.xlane.f32.xlu0 %v1275_v10  ;;  %1290 = vadd.xlane.f32.xlu1 %v1274_v11  ;;  %v1325_v10 = vrot.slane %v1921_v9, %v1324_v8 }
 0x45f   : > { %v1898_v12 = vpop.eup %1897 }
 0x460   : > { %v1900_v13 = vpop.eup %1899 }
 0x461   : > { %v1902_v14 = vpop.eup %1901 }
 0x462   : > { %v1904_v15 = vpop.eup %1903  ;;  %v1246_v16 = vpack.c.bf16 %v1902_v14, %v1898_v12 }
 0x463   : > { %v1245_v17 = vpack.c.bf16 %v1904_v15, %v1900_v13 }
 0x464   : > { %v1257_v18 = vunpack.c.l.bf16 %v1246_v16  ;;  %v1258_v19 = vunpack.c.h.bf16 %v1246_v16 }
 0x465   : > { %v1255_v22 = vunpack.c.l.bf16 %v1245_v17  ;;  %v1256_v23 = vunpack.c.h.bf16 %v1245_v17 }
 0x466   : > { %v1280_v20 = vmul.f32 %v2253_v60, %v1257_v18  ;;  %v1281_v21 = vmul.f32 %v2253_v60, %v1258_v19 }
 0x467   : > { %v1278_v25 = vmul.f32 %v2253_v60, %v1255_v22  ;;  %v1279_v26 = vmul.f32 %v2253_v60, %v1256_v23 }
 0x468   : > { %1302 = vadd.xlane.f32.xlu0 %v1280_v20  ;;  %1304 = vadd.xlane.f32.xlu1 %v1281_v21 }
 0x46a   : > { %v1695_v24 = vpop.f32.mrb[24].mxu1 }
 0x46b   : > { %v1205_v27 = vadd.f32 %v1695_v24, %v2244_v46  ;;  %v1196_v28 = vpop.f32.mrb[25].mxu1 }
 0x46c   : > { %v1197_v29 = vadd.f32 %v1196_v28, %v2244_v46  ;;  %v1696_v30 = vpop.f32.mrb[26].mxu1  ;;  %1298 = vadd.xlane.f32.xlu0 %v1278_v25  ;;  %1300 = vadd.xlane.f32.xlu1 %v1279_v26 }
 0x46d   : > { %1905 = vtanh.f32 %v1205_v27  ;;  %v1208_v31 = vadd.f32 %v1696_v30, %v2244_v46  ;;  %v1199_v32 = vpop.f32.mrb[27].mxu1 }
 0x46e   : > { %1907 = vtanh.f32 %v1197_v29  ;;  %v1200_v40 = vadd.f32 %v1199_v32, %v2244_v46 }
 0x46f   : > { %1909 = vtanh.f32 %v1208_v31 }
 0x470   : > { %1911 = vtanh.f32 %v1200_v40 }
 0x477   : > { %v1906_v37 = vpop.eup %1905 }
 0x478   : > { %v1908_v45 = vpop.eup %1907 }
 0x479   : > { %v1910_v33 = vpop.eup %1909 }
 0x47a   : > { %v1912_v36 = vpop.eup %1911  ;;  %v1248_v38 = vpack.c.bf16 %v1910_v33, %v1906_v37 }
 0x47b   : > { %v1247_v41 = vpack.c.bf16 %v1912_v36, %v1908_v45 }
 0x47c   : > { %v1261_v42 = vunpack.c.l.bf16 %v1248_v38  ;;  %v1262_v43 = vunpack.c.h.bf16 %v1248_v38 }
 0x47d   : > { %v1259_v48 = vunpack.c.l.bf16 %v1247_v41  ;;  %v1260_v49 = vunpack.c.h.bf16 %v1247_v41 }
 0x47e   : > { %v1284_v44 = vmul.f32 %v2253_v60, %v1261_v42  ;;  %v1285_v47 = vmul.f32 %v2253_v60, %v1262_v43 }
 0x47f   : > { %v1282_v51 = vmul.f32 %v2253_v60, %v1259_v48  ;;  %v1283_v52 = vmul.f32 %v2253_v60, %v1260_v49 }
 0x480   : > { %1310 = vadd.xlane.f32.xlu0 %v1284_v44  ;;  %1312 = vadd.xlane.f32.xlu1 %v1285_v47 }
 0x482   : > { %v1699_v50 = vpop.f32.mrb[28].mxu1 }
 0x483   : > { %v1221_v53 = vadd.f32 %v1699_v50, %v2244_v46  ;;  %v1212_v54 = vpop.f32.mrb[29].mxu1 }
 0x484   : > { %v1213_v55 = vadd.f32 %v1212_v54, %v2244_v46  ;;  %1306 = vadd.xlane.f32.xlu0 %v1282_v51  ;;  %1308 = vadd.xlane.f32.xlu1 %v1283_v52  ;;  %v1700_v56 = vpop.f32.mrb[30].mxu1 }
 0x485   : > { %1913 = vtanh.f32 %v1221_v53  ;;  %v1224_v39 = vadd.f32 %v1700_v56, %v2244_v46  ;;  %v1215_v57 = vpop.f32.mrb[31].mxu1 }
 0x486   : > { %1915 = vtanh.f32 %v1213_v55  ;;  %v1216_v58 = vadd.f32 %v1215_v57, %v2244_v46 }
 0x487   : > { %1917 = vtanh.f32 %v1224_v39 }
 0x488   : > { %1919 = vtanh.f32 %v1216_v58 }
 0x48f   : > { %v1914_v59 = vpop.eup %1913 }
 0x490   : > { %v1916_v61 = vpop.eup %1915 }
 0x491   : > { %v1918_v35 = vpop.eup %1917 }
 0x492   : > { %v1920_v62 = vpop.eup %1919  ;;  %v1250_v63 = vpack.c.bf16 %v1918_v35, %v1914_v59 }
 0x493   : > { %v1249_v0 = vpack.c.bf16 %v1920_v62, %v1916_v61 }
 0x494   : > { %v1266_v5 = vunpack.c.h.bf16 %v1250_v63  ;;  %v1265_v6 = vunpack.c.l.bf16 %v1250_v63 }
 0x495   : > { %v1264_v1 = vunpack.c.h.bf16 %v1249_v0  ;;  %v1263_v2 = vunpack.c.l.bf16 %v1249_v0 }
 0x496   : > { %v1289_v46 = vmul.f32 %v2253_v60, %v1266_v5  ;;  %v1288_v7 = vmul.f32 %v2253_v60, %v1265_v6 }
 0x497   : > { %v1287_v3 = vmul.f32 %v2253_v60, %v1264_v1  ;;  %v1286_v4 = vmul.f32 %v2253_v60, %v1263_v2 }
 0x499   : > { %1316 = vadd.xlane.f32.xlu1 %v1287_v3  ;;  %1314 = vadd.xlane.f32.xlu0 %v1286_v4 }
 0x49d   : > { %1320 = vadd.xlane.f32.xlu1 %v1289_v46  ;;  %1318 = vadd.xlane.f32.xlu0 %v1288_v7 }
 0x4e4   : > { %v1297_v60 = vpop.xlane.xlu1 %1296  ;;  %v1295_v11 = vpop.xlane.xlu0 %1294 }
 0x4e5   : > { %v1329_v34 = vadd.f32 %v1325_v10, %v1297_v60  ;;  %v1328_v12 = vadd.f32 %v1325_v10, %v1295_v11 }
 0x4e7   : > { %1346 = vst.msk [vmem:[%s2292_s10 + $0x18] sm:$0xff] %vm1342_vm0, %v1329_v34  ;;  %1345 = vst.msk [vmem:[%s2292_s10 + $0x10] sm:$0xff] %vm1342_vm0, %v1328_v12 }
 0x4e8   : > { %v1293_v13 = vpop.xlane.xlu0 %1292  ;;  %v1291_v14 = vpop.xlane.xlu1 %1290 }
 0x4e9   : > { %v1327_v15 = vadd.f32 %v1325_v10, %v1293_v13  ;;  %v1326_v16 = vadd.f32 %v1325_v10, %v1291_v14 }
 0x4eb   : > { %1344 = vst.msk [vmem:[%s2292_s10 + $0x8] sm:$0xff] %vm1342_vm0, %v1327_v15  ;;  %1343 = vst.msk [vmem:[%s2292_s10] sm:$0xff] %vm1342_vm0, %v1326_v16 }
 0x4f5   : > { %v1303_v17 = vpop.xlane.xlu0 %1302  ;;  %v1305_v18 = vpop.xlane.xlu1 %1304 }
 0x4f6   : > { %v1332_v19 = vadd.f32 %v1325_v10, %v1303_v17  ;;  %v1333_v20 = vadd.f32 %v1325_v10, %v1305_v18 }
 0x4f8   : > { %1349 = vst.msk [vmem:[%s2292_s10 + $0x30] sm:$0xff] %vm1342_vm0, %v1332_v19  ;;  %1350 = vst.msk [vmem:[%s2292_s10 + $0x38] sm:$0xff] %vm1342_vm0, %v1333_v20 }
 0x4f9   : > { %v1299_v21 = vpop.xlane.xlu0 %1298  ;;  %v1301_v22 = vpop.xlane.xlu1 %1300 }
 0x4fa   : > { %v1330_v23 = vadd.f32 %v1325_v10, %v1299_v21  ;;  %v1331_v24 = vadd.f32 %v1325_v10, %v1301_v22 }
 0x4fc   : > { %1347 = vst.msk [vmem:[%s2292_s10 + $0x20] sm:$0xff] %vm1342_vm0, %v1330_v23  ;;  %1348 = vst.msk [vmem:[%s2292_s10 + $0x28] sm:$0xff] %vm1342_vm0, %v1331_v24 }
 0x50d   : > { %v1311_v25 = vpop.xlane.xlu0 %1310  ;;  %v1313_v26 = vpop.xlane.xlu1 %1312 }
 0x50e   : > { %v1336_v27 = vadd.f32 %v1325_v10, %v1311_v25  ;;  %v1337_v28 = vadd.f32 %v1325_v10, %v1313_v26 }
 0x510   : > { %1353 = vst.msk [vmem:[%s2292_s10 + $0x50] sm:$0xff] %vm1342_vm0, %v1336_v27  ;;  %1354 = vst.msk [vmem:[%s2292_s10 + $0x58] sm:$0xff] %vm1342_vm0, %v1337_v28 }
 0x511   : > { %v1307_v29 = vpop.xlane.xlu0 %1306  ;;  %v1309_v30 = vpop.xlane.xlu1 %1308 }
 0x512   : > { %v1334_v31 = vadd.f32 %v1325_v10, %v1307_v29  ;;  %v1335_v32 = vadd.f32 %v1325_v10, %v1309_v30 }
 0x514   : > { %1351 = vst.msk [vmem:[%s2292_s10 + $0x40] sm:$0xff] %vm1342_vm0, %v1334_v31  ;;  %1352 = vst.msk [vmem:[%s2292_s10 + $0x48] sm:$0xff] %vm1342_vm0, %v1335_v32 }
 0x526   : > { %v1317_v40 = vpop.xlane.xlu1 %1316  ;;  %v1315_v37 = vpop.xlane.xlu0 %1314 }
 0x527   : > { %v1339_v45 = vadd.f32 %v1325_v10, %v1317_v40  ;;  %v1338_v33 = vadd.f32 %v1325_v10, %v1315_v37 }
 0x529   : > { %1356 = vst.msk [vmem:[%s2292_s10 + $0x68] sm:$0xff] %vm1342_vm0, %v1339_v45  ;;  %1355 = vst.msk [vmem:[%s2292_s10 + $0x60] sm:$0xff] %vm1342_vm0, %v1338_v33 }
 0x52a   : > { %v1321_v36 = vpop.xlane.xlu1 %1320  ;;  %v1319_v38 = vpop.xlane.xlu0 %1318 }
 0x52b   : > { %v1341_v41 = vadd.f32 %v1325_v10, %v1321_v36  ;;  %v1340_v42 = vadd.f32 %v1325_v10, %v1319_v38 }
 0x52d   : > { %1358 = vst.msk [vmem:[%s2292_s10 + $0x78] sm:$0xff] %vm1342_vm0, %v1341_v41  ;;  %1357 = vst.msk [vmem:[%s2292_s10 + $0x70] sm:$0xff] %vm1342_vm0, %v1340_v42 }
 0x52e PF: > { %s15_s18 = sadd.s32 1, %s1928_s18  }
 0x52f   : > { %p12_p4 = scmp.ge.s32.totalorder %s15_s18, 4  }
 0x531   :  { %14 = sbr.rel (!%p12_p4) target bundleno = 1 (0x1), region = 73 }

</bundles_post_ra>
